<compile_context>
chip_gen: v6e
topology: v6e:2x2x1
jax: 0.10.0
libtpu: 0.0.40
codegen_flags: <defaults>
</compile_context>

<pallas_src>
import functools
import numpy as np

import jax
import jax.numpy as jnp
from jax.experimental import pallas as pl
from jax.experimental.pallas import tpu as pltpu

OPS_KEYS = ["conv3x3-bn-relu", "conv1x1-bn-relu", "maxpool3x3"]

_PARALLEL_1D = pltpu.CompilerParams(dimension_semantics=("parallel",))


# ----------------------------------------------------------------------------
# small helpers
# ----------------------------------------------------------------------------
def _round_up(x, m):
    return (x + m - 1) // m * m


def _as_list(xs):
    return list(xs) if isinstance(xs, (list, tuple)) else [xs]


def _choose_tile_m(m, target=128):
    """Largest multiple-of-8 divisor of m that is <= target (else one block)."""
    t = min(target, m)
    while t >= 8:
        if m % t == 0 and t % 8 == 0:
            return t
        t -= 1
    return m


def _bytes_of(*arrs):
    return int(sum(int(np.prod(a.shape)) * np.dtype(a.dtype).itemsize for a in arrs))


# ----------------------------------------------------------------------------
# Pallas kernels
# ----------------------------------------------------------------------------
def _mm_bias_kernel(*refs, n_in, n_post, relu, compute_dtype):
    # refs = x[n_in] (TM,Cin), w (Cin,Cout), b (1,Cout), post[n_post] (TM,Cout),
    #        o (TM,Cout)
    x_refs = refs[:n_in]
    w_ref = refs[n_in]
    b_ref = refs[n_in + 1]
    post_refs = refs[n_in + 2:n_in + 2 + n_post]
    o_ref = refs[n_in + 2 + n_post]

    x = x_refs[0][...].astype(jnp.float32)
    for r in x_refs[1:]:                                  # fused DAG-edge adds (f32)
        x = x + r[...].astype(jnp.float32)
    acc = jnp.dot(x.astype(compute_dtype), w_ref[...],
                  preferred_element_type=jnp.float32)
    acc = acc + b_ref[...]
    if relu:
        acc = jnp.maximum(acc, 0.0)
    if n_post:
        # mirror the quantization a stored (non-fused) intermediate would get
        acc = acc.astype(compute_dtype).astype(jnp.float32)
        for r in post_refs:                               # fused final-output sum
            acc = acc + r[...].astype(jnp.float32)
    o_ref[...] = acc.astype(o_ref.dtype)


def _conv3x3_kernel(*refs, n_in, n_post, H, W, W_pad, cin, relu, compute_dtype):
    # refs = x[n_in] (1,H,W,Cin), w (9,Cin,Cout), b (1,Cout),
    #        post[n_post] (1,H,W,Cout), o (1,H,W,Cout), pad scratch (H+4,W_pad,Cin)
    x_refs = refs[:n_in]
    w_ref = refs[n_in]
    b_ref = refs[n_in + 1]
    post_refs = refs[n_in + 2:n_in + 2 + n_post]
    o_ref = refs[n_in + 2 + n_post]
    pad_ref = refs[n_in + 2 + n_post + 1]

    # Re-init only the halo border regions every step (interior is overwritten).
    # Done per-step (not @program_id==0) so a 'parallel' megacore split is safe.
    pad_ref[0:2, :, :] = jnp.zeros((2, W_pad, cin), pad_ref.dtype)
    pad_ref[H + 2:H + 4, :, :] = jnp.zeros((2, W_pad, cin), pad_ref.dtype)
    pad_ref[:, W:, :] = jnp.zeros((H + 4, W_pad - W, cin), pad_ref.dtype)

    x = x_refs[0][0].astype(jnp.float32)
    for r in x_refs[1:]:                                  # fused DAG-edge adds (f32)
        x = x + r[0].astype(jnp.float32)
    pad_ref[2:H + 2, 0:W, :] = x                          # sublane-aligned store

    # Flattened padded image: every 3x3 tap is ONE sublane-offset slice of this
    # 2-D array.  Output pixel m = y*W_pad + x; tap (ky,kx) reads
    # flat[m + (ky+1)*W_pad + kx - 1]; the "-1 wrap" lands on the zeroed
    # trailing columns, which supplies the left halo for free.
    xflat = pad_ref[...].reshape((H + 4) * W_pad, cin)
    M = H * W_pad
    acc = None
    for t in range(9):
        ky, kx = divmod(t, 3)
        off = (ky + 1) * W_pad + (kx - 1)
        tap = xflat[off:off + M, :].astype(compute_dtype)
        d = jnp.dot(tap, w_ref[t], preferred_element_type=jnp.float32)
        acc = d if acc is None else acc + d
    acc = acc + b_ref[...]
    if relu:
        acc = jnp.maximum(acc, 0.0)
    y = acc.reshape(H, W_pad, -1)[:, :W, :]               # drop padded-width cols
    if n_post:
        y = y.astype(compute_dtype).astype(jnp.float32)
        for r in post_refs:                               # fused final-output sum
            y = y + r[0].astype(jnp.float32)
    o_ref[0] = y.astype(o_ref.dtype)


def _maxpool_kernel(*refs, n_in, n_post, H, W, W_pad, compute_dtype):
    # refs = x[n_in] (1,H,W,C), post[n_post] (1,H,W,C), o (1,H,W,C),
    #        pad scratch (H+4,W_pad,C)
    x_refs = refs[:n_in]
    post_refs = refs[n_in:n_in + n_post]
    o_ref = refs[n_in + n_post]
    pad_ref = refs[n_in + n_post + 1]

    c = pad_ref.shape[-1]
    neg = float("-inf")
    pad_ref[0:2, :, :] = jnp.full((2, W_pad, c), neg, pad_ref.dtype)
    pad_ref[H + 2:H + 4, :, :] = jnp.full((2, W_pad, c), neg, pad_ref.dtype)
    pad_ref[:, W:, :] = jnp.full((H + 4, W_pad - W, c), neg, pad_ref.dtype)

    x = x_refs[0][0].astype(jnp.float32)
    for r in x_refs[1:]:                                  # fused DAG-edge adds (f32)
        x = x + r[0].astype(jnp.float32)
    pad_ref[2:H + 2, 0:W, :] = x

    xflat = pad_ref[...].reshape((H + 4) * W_pad, c)
    M = H * W_pad
    m = None
    for t in range(9):
        ky, kx = divmod(t, 3)
        off = (ky + 1) * W_pad + (kx - 1)
        tap = xflat[off:off + M, :]
        m = tap if m is None else jnp.maximum(m, tap)
    y = m.reshape(H, W_pad, -1)[:, :W, :]
    if n_post:
        y = y.astype(compute_dtype).astype(jnp.float32)
        for r in post_refs:                               # fused final-output sum
            y = y + r[0].astype(jnp.float32)
    o_ref[0] = y.astype(o_ref.dtype)


def _sum_kernel(*refs, n_in):
    x_refs = refs[:n_in]
    o_ref = refs[n_in]
    acc = x_refs[0][...].astype(jnp.float32)
    for r in x_refs[1:]:
        acc = acc + r[...].astype(jnp.float32)
    o_ref[...] = acc.astype(o_ref.dtype)


# ----------------------------------------------------------------------------
# Pallas-backed ops (wrappers = glue only: reshape / spec construction)
# ----------------------------------------------------------------------------
def conv1x1_pallas(xs, w, b, *, relu, post=(), out_dtype=None, tile_m=128):
    xs = _as_list(xs)
    post = _as_list(post)
    n, h, wd, cin = xs[0].shape
    cout = w.shape[-1]
    m = n * h * wd
    tm = _choose_tile_m(m, tile_m)
    out_dtype = out_dtype or xs[0].dtype
    compute_dtype = w.dtype
    flats = [x.reshape(m, cin) for x in xs]
    pflats = [p.reshape(m, cout) for p in post]
    b2 = b.reshape(1, cout).astype(jnp.float32)

    in_specs = ([pl.BlockSpec((tm, cin), lambda i: (i, 0))] * len(flats)
                + [pl.BlockSpec((cin, cout), lambda i: (0, 0)),
                   pl.BlockSpec((1, cout), lambda i: (0, 0))]
                + [pl.BlockSpec((tm, cout), lambda i: (i, 0))] * len(pflats))
    flops = int(2 * m * cin * cout + (len(flats) - 1 + len(pflats)) * m * cout)
    bytes_accessed = _bytes_of(*flats, w, b2, *pflats) + \
        int(m * cout * np.dtype(out_dtype).itemsize)

    out = pl.pallas_call(
        functools.partial(_mm_bias_kernel, n_in=len(flats), n_post=len(pflats),
                          relu=relu, compute_dtype=compute_dtype),
        out_shape=jax.ShapeDtypeStruct((m, cout), out_dtype),
        grid=(m // tm,),
        in_specs=in_specs,
        out_specs=pl.BlockSpec((tm, cout), lambda i: (i, 0)),
        compiler_params=_PARALLEL_1D,
        cost_estimate=pl.CostEstimate(flops=flops, transcendentals=0,
                                      bytes_accessed=bytes_accessed),
    )(*flats, w, b2, *pflats)
    return out.reshape(n, h, wd, cout)


def conv3x3_pallas(xs, w, b, *, relu=True, post=(), out_dtype=None):
    xs = _as_list(xs)
    post = _as_list(post)
    n, h, wd, cin = xs[0].shape
    cout = w.shape[-1]
    w_pad = _round_up(wd + 2, 8)
    out_dtype = out_dtype or xs[0].dtype
    compute_dtype = w.dtype
    wt = w.reshape(9, cin, cout)                   # (ky,kx,ci,co) -> (9,ci,co)
    b2 = b.reshape(1, cout).astype(jnp.float32)

    x_spec = pl.BlockSpec((1, h, wd, cin), lambda i: (i, 0, 0, 0))
    p_spec = pl.BlockSpec((1, h, wd, cout), lambda i: (i, 0, 0, 0))
    in_specs = ([x_spec] * len(xs)
                + [pl.BlockSpec((9, cin, cout), lambda i: (0, 0, 0)),
                   pl.BlockSpec((1, cout), lambda i: (0, 0))]
                + [p_spec] * len(post))
    flops = int(2 * 9 * n * h * wd * cin * cout)
    bytes_accessed = _bytes_of(*xs, wt, b2, *post) + \
        int(n * h * wd * cout * np.dtype(out_dtype).itemsize)

    return pl.pallas_call(
        functools.partial(_conv3x3_kernel, n_in=len(xs), n_post=len(post),
                          H=h, W=wd, W_pad=w_pad, cin=cin, relu=relu,
                          compute_dtype=compute_dtype),
        out_shape=jax.ShapeDtypeStruct((n, h, wd, cout), out_dtype),
        grid=(n,),
        in_specs=in_specs,
        out_specs=pl.BlockSpec((1, h, wd, cout), lambda i: (i, 0, 0, 0)),
        scratch_shapes=[pltpu.VMEM((h + 4, w_pad, cin), jnp.float32)],
        compiler_params=_PARALLEL_1D,
        cost_estimate=pl.CostEstimate(flops=flops, transcendentals=0,
                                      bytes_accessed=bytes_accessed),
    )(*xs, wt, b2, *post)


def maxpool3x3_pallas(xs, *, post=(), out_dtype=None):
    xs = _as_list(xs)
    post = _as_list(post)
    n, h, wd, c = xs[0].shape
    w_pad = _round_up(wd + 2, 8)
    out_dtype = out_dtype or xs[0].dtype
    compute_dtype = xs[0].dtype
    x_spec = pl.BlockSpec((1, h, wd, c), lambda i: (i, 0, 0, 0))
    bytes_accessed = _bytes_of(*xs, *post) + \
        int(n * h * wd * c * np.dtype(out_dtype).itemsize)

    return pl.pallas_call(
        functools.partial(_maxpool_kernel, n_in=len(xs), n_post=len(post),
                          H=h, W=wd, W_pad=w_pad, compute_dtype=compute_dtype),
        out_shape=jax.ShapeDtypeStruct((n, h, wd, c), out_dtype),
        grid=(n,),
        in_specs=[x_spec] * (len(xs) + len(post)),
        out_specs=pl.BlockSpec((1, h, wd, c), lambda i: (i, 0, 0, 0)),
        scratch_shapes=[pltpu.VMEM((h + 4, w_pad, c), jnp.float32)],
        compiler_params=_PARALLEL_1D,
        cost_estimate=pl.CostEstimate(flops=int(9 * n * h * wd * c),
                                      transcendentals=0,
                                      bytes_accessed=bytes_accessed),
    )(*xs, *post)


def add_n_pallas(xs, *, out_dtype=None, tile_m=128):
    # Fallback path only (used when the final sum cannot be fused).
    xs = _as_list(xs)
    out_dtype = out_dtype or xs[0].dtype
    if len(xs) == 1:
        return xs[0].astype(out_dtype)
    n, h, wd, c = xs[0].shape
    m = n * h * wd
    tm = _choose_tile_m(m, tile_m)
    flats = [x.reshape(m, c) for x in xs]
    out = pl.pallas_call(
        functools.partial(_sum_kernel, n_in=len(flats)),
        out_shape=jax.ShapeDtypeStruct((m, c), out_dtype),
        grid=(m // tm,),
        in_specs=[pl.BlockSpec((tm, c), lambda i: (i, 0))] * len(flats),
        out_specs=pl.BlockSpec((tm, c), lambda i: (i, 0)),
        compiler_params=_PARALLEL_1D,
        cost_estimate=pl.CostEstimate(
            flops=int((len(flats) - 1) * m * c), transcendentals=0,
            bytes_accessed=_bytes_of(*flats) +
            int(m * c * np.dtype(out_dtype).itemsize)),
    )(*flats)
    return out.reshape(n, h, wd, c)


# ----------------------------------------------------------------------------
# Cell: parameter construction + forward (graph glue in Python/JAX)
# ----------------------------------------------------------------------------
def make_cell_params(key, matrix, ops, prev_C, current_C):
    nbr_op = matrix.shape[0] - 1
    params = []
    key, k = jax.random.split(key)
    params.append(dict(
        type="stem",
        w=0.1 * jax.random.normal(k, (prev_C, current_C), jnp.float32),
        b=0.01 * jnp.arange(current_C, dtype=jnp.float32),
    ))
    for op_idx in range(1, nbr_op):
        name = OPS_KEYS[ops[op_idx - 1]]
        key, k1, k2 = jax.random.split(key, 3)
        if name == "conv3x3-bn-relu":
            params.append(dict(
                type="conv3x3",
                w=0.1 * jax.random.normal(k1, (3, 3, current_C, current_C), jnp.float32),
                b=0.01 * jax.random.normal(k2, (current_C,), jnp.float32),
            ))
        elif name == "conv1x1-bn-relu":
            params.append(dict(
                type="conv1x1",
                w=0.1 * jax.random.normal(k1, (current_C, current_C), jnp.float32),
                b=0.01 * jax.random.normal(k2, (current_C,), jnp.float32),
            ))
        else:
            params.append(dict(type="maxpool3x3"))
    return params


def cast_params(params, dtype):
    out = []
    for p in params:
        q = dict(p)
        if "w" in q:
            q["w"] = q["w"].astype(dtype)      # weights in compute dtype, biases f32
        out.append(q)
    return out


def _apply_op(p, xs, *, post=(), out_dtype=None):
    if p["type"] == "conv1x1":
        return conv1x1_pallas(xs, p["w"], p["b"], relu=True, post=post,
                              out_dtype=out_dtype)
    if p["type"] == "conv3x3":
        return conv3x3_pallas(xs, p["w"], p["b"], relu=True, post=post,
                              out_dtype=out_dtype)
    return maxpool3x3_pallas(xs, post=post, out_dtype=out_dtype)


def cell_forward(params, matrix, x_nchw, stack_id):
    compute_dtype = params[0]["w"].dtype
    nbr_op = matrix.shape[0] - 1
    x = jnp.transpose(x_nchw, (0, 2, 3, 1)).astype(compute_dtype)  # NCHW -> NHWC
    outputs = [None] * nbr_op
    if stack_id == 0:
        outputs[0] = x
    else:
        outputs[0] = conv1x1_pallas([x], params[0]["w"], params[0]["b"], relu=False)

    out_in_nodes = list(np.where(matrix[:, nbr_op] == 1)[0])
    last = nbr_op - 1
    fuse_final = (last >= 1) and (last in out_in_nodes)

    for op_idx in range(1, nbr_op):
        in_nodes = list(np.where(matrix[:, op_idx] == 1)[0])
        xs = [outputs[i] for i in in_nodes]               # edge adds fused in-kernel
        post, odt = [], None
        if fuse_final and op_idx == last:
            # PyTorch semantics: outputs[0] + sum(outputs[i] for i in in_nodes);
            # node 0 may be counted twice, exactly as in the original module.
            post = [outputs[0]] + [outputs[i] for i in out_in_nodes if i != last]
            odt = jnp.float32
        outputs[op_idx] = _apply_op(params[op_idx], xs, post=post, out_dtype=odt)

    if fuse_final:
        res = outputs[last]
    else:
        res = add_n_pallas([outputs[0]] + [outputs[i] for i in out_in_nodes],
                           out_dtype=jnp.float32)
    return jnp.transpose(res, (0, 3, 1, 2)).astype(jnp.float32)  # NHWC -> NCHW


# ----------------------------------------------------------------------------
# Plain-JAX reference (correctness check only; mirrors the node-boundary
# quantization of the Pallas path so bf16 / f32 configs both compare tightly)
# ----------------------------------------------------------------------------
def ref_cell_forward(params, matrix, x_nchw, stack_id):
    cd = params[0]["w"].dtype
    nbr_op = matrix.shape[0] - 1
    x = jnp.transpose(x_nchw, (0, 2, 3, 1)).astype(cd)
    outputs = [None] * nbr_op
    if stack_id == 0:
        outputs[0] = x
    else:
        p = params[0]
        y = jnp.einsum("nhwi,io->nhwo", x, p["w"],
                       preferred_element_type=jnp.float32) + p["b"]
        outputs[0] = y.astype(cd)
    for op_idx in range(1, nbr_op):
        in_nodes = list(np.where(matrix[:, op_idx] == 1)[0])
        s = outputs[in_nodes[0]].astype(jnp.float32)
        for i in in_nodes[1:]:
            s = s + outputs[i].astype(jnp.float32)
        p = params[op_idx]
        if p["type"] == "conv1x1":
            y = jnp.einsum("nhwi,io->nhwo", s.astype(cd), p["w"],
                           preferred_element_type=jnp.float32) + p["b"]
            outputs[op_idx] = jnp.maximum(y, 0.0).astype(cd)
        elif p["type"] == "conv3x3":
            y = jax.lax.conv_general_dilated(
                s.astype(cd), p["w"], (1, 1), "SAME",
                dimension_numbers=("NHWC", "HWIO", "NHWC"),
                preferred_element_type=jnp.float32) + p["b"]
            outputs[op_idx] = jnp.maximum(y, 0.0).astype(cd)
        else:
            y = jax.lax.reduce_window(s, -jnp.inf, jax.lax.max,
                                      (1, 3, 3, 1), (1, 1, 1, 1), "SAME")
            outputs[op_idx] = y.astype(cd)
    in_nodes = list(np.where(matrix[:, nbr_op] == 1)[0])
    res = outputs[0].astype(jnp.float32)
    for i in in_nodes:
        res = res + outputs[i].astype(jnp.float32)
    return jnp.transpose(res, (0, 3, 1, 2))


# ----------------------------------------------------------------------------
if __name__ == "__main__":
    key = jax.random.PRNGKey(0)
    # 5-node DAG: node0=stem, nodes1..3=ops, node4=output
    matrix = np.array(
        [[0, 1, 1, 0, 1],
         [0, 0, 1, 0, 0],
         [0, 0, 0, 1, 0],
         [0, 0, 0, 0, 1],
         [0, 0, 0, 0, 0]], dtype=np.int32)
    ops = [0, 1, 2]          # conv3x3-bn-relu, conv1x1-bn-relu, maxpool3x3
    prev_C, current_C = 4, 128   # current_C=128 -> lane-dense channel dim

    k_x, k_p = jax.random.split(key)
    x = jax.random.normal(k_x, (2, prev_C, 16, 16), jnp.float32)  # NCHW like PyTorch
    params_f32 = make_cell_params(k_p, matrix, ops, prev_C, current_C)

    # ---- f32 path: tight parity check of the kernel / DAG / fusion logic ----
    out32 = jax.block_until_ready(cell_forward(params_f32, matrix, x, stack_id=1))
    assert out32.shape == (2, current_C, 16, 16)
    ref32 = ref_cell_forward(params_f32, matrix, x, stack_id=1)
    np.testing.assert_allclose(np.asarray(out32), np.asarray(ref32),
                               rtol=2e-3, atol=2e-3)

    # ---- bf16 path (the perf config for v6e/v7x): bf16 weights/activations,
    # f32 accumulation.  Intermediates are quantized to bf16 at node
    # boundaries, so agreement with the reference is limited to ~1-2 bf16 ulps
    # of the (O(1)-O(10)) intermediate values -> looser tolerance.
    params_bf16 = cast_params(params_f32, jnp.bfloat16)
    out16 = jax.block_until_ready(cell_forward(params_bf16, matrix, x, stack_id=1))
    ref16 = ref_cell_forward(params_bf16, matrix, x, stack_id=1)
    np.testing.assert_allclose(np.asarray(out16), np.asarray(ref16),
                               rtol=2e-2, atol=1e-1)

    print("KERNEL_OK")
</pallas_src>

<mosaic_0001>
module attributes {stable_mosaic.version = 11 : i64} {
  func.func @_mm_bias_kernel(%arg0: i32, %arg1: memref<128x4xf32, #tpu.memory_space<vmem>>, %arg2: memref<4x128xf32, #tpu.memory_space<vmem>>, %arg3: memref<1x128xf32, #tpu.memory_space<vmem>>, %arg4: memref<128x128xf32, #tpu.memory_space<vmem>>) attributes {dimension_semantics = [#tpu.dimension_semantics<parallel>], iteration_bounds = array<i64: 4>, scalar_prefetch = 0 : i64, scratch_operands = 0 : i64, tpu.core_type = #tpu.core_type<tc>, window_params = [{transform_indices = @transform_0, window_bounds = array<i64: 128, 4>}, {pipeline_mode = #tpu.pipeline_mode<synchronous>, transform_indices = @transform_1, window_bounds = array<i64: 4, 128>}, {pipeline_mode = #tpu.pipeline_mode<synchronous>, transform_indices = @transform_2, window_bounds = array<i64: 1, 128>}, {transform_indices = @transform_3, window_bounds = array<i64: 128, 128>}]} {
    %c0 = arith.constant 0 : index
    %c0_0 = arith.constant 0 : index
    %0 = vector.load %arg1[%c0, %c0_0] : memref<128x4xf32, #tpu.memory_space<vmem>>, vector<128x4xf32>
    %c0_1 = arith.constant 0 : index
    %c0_2 = arith.constant 0 : index
    %1 = vector.load %arg2[%c0_1, %c0_2] : memref<4x128xf32, #tpu.memory_space<vmem>>, vector<4x128xf32>
    %cst = arith.constant dense<0.000000e+00> : vector<128x128xf32>
    %2 = tpu.matmul %0, %1, %cst {dimension_numbers = #tpu.dot_dimension_numbers<[1], [0], [0], [1], [0, 0, 1, 1], [], []>} : vector<128x4xf32>, vector<4x128xf32>, vector<128x128xf32> -> vector<128x128xf32>
    %c0_3 = arith.constant 0 : index
    %c0_4 = arith.constant 0 : index
    %3 = vector.load %arg3[%c0_3, %c0_4] : memref<1x128xf32, #tpu.memory_space<vmem>>, vector<1x128xf32>
    %4 = vector.broadcast %3 : vector<1x128xf32> to vector<128x128xf32>
    %5 = arith.addf %2, %4 : vector<128x128xf32>
    %c0_5 = arith.constant 0 : index
    %c0_6 = arith.constant 0 : index
    %6 = vector.load %arg4[%c0_5, %c0_6] : memref<128x128xf32, #tpu.memory_space<vmem>>, vector<128x128xf32>
    tpu.vector_store %arg4[%c0_5, %c0_6], %5 {strides = array<i32>} : memref<128x128xf32, #tpu.memory_space<vmem>>, vector<128x128xf32>,
    return
  }
  func.func @transform_0(%arg0: i32) -> (i32, i32) {
    %c0_i32 = arith.constant 0 : i32
    %c0_i32_0 = arith.constant 0 : i32
    return %arg0, %c0_i32 : i32, i32
  }
  func.func @transform_1(%arg0: i32) -> (i32, i32) {
    %c0_i32 = arith.constant 0 : i32
    %c0_i32_0 = arith.constant 0 : i32
    %c0_i32_1 = arith.constant 0 : i32
    return %c0_i32, %c0_i32_0 : i32, i32
  }
  func.func @transform_2(%arg0: i32) -> (i32, i32) {
    %c0_i32 = arith.constant 0 : i32
    %c0_i32_0 = arith.constant 0 : i32
    %c0_i32_1 = arith.constant 0 : i32
    return %c0_i32, %c0_i32_0 : i32, i32
  }
  func.func @transform_3(%arg0: i32) -> (i32, i32) {
    %c0_i32 = arith.constant 0 : i32
    %c0_i32_0 = arith.constant 0 : i32
    return %arg0, %c0_i32 : i32, i32
  }
}

</mosaic_0001>

<bundles_post_ra>
// kernel: tpu_custom_call.1
= control target key start
LH: loop header
LB: loop body
LE: loop exit
PB: predicated region body
PF: predicated region fallthrough
CT: control target
= control target key end

     0   :  { %8 = vsyncpa [#allocation3], 0  ;;  %s834_s0 = inlined_call_operand.vmem [shape: f32[512,4], index: 0, kind: input, shape index: {}]   ;;  %s835_s1 = inlined_call_operand.vmem [shape: f32[4,128], index: 1, kind: input, shape index: {}]   ;;  %s836_s2 = inlined_call_operand.vmem [shape: f32[1,128], index: 2, kind: input, shape index: {}]   ;;  %s837_s3 = inlined_call_operand.hbm [shape: f32[512,128], index: 3, kind: output, shape index: {}]  }
   0x1   :  { %10 = vsyncpa [#allocation3 + $0x1], 0  ;;  %s688_s12 = smov 0   ;;  %s690_s13 = smov 0  }
   0x2   :  { %s692_s14 = smov 0   ;;  %s694_s15 = smov 0  }
   0x3 LB: > { %s709_s16 = sadd.s32 4294967295, %s663_s15   ;;  %s486_s17 = sadd.s32 4294967294, %s663_s15   ;;  %s663_s15 = sphi %s694_s15, %s843_s15   ;;  %s659_s14 = sphi %s692_s14, %s842_s14   ;;  %s655_s13 = sphi %s690_s13, %s841_s13   ;;  %s651_s12 = sphi %s688_s12, %s840_s12  }
   0x4   : > { %s713_s18 = sadd.s32 1, %s663_s15   ;;  %s91_s19 = sadd.s32 1, %s659_s14 }
   0x5   : > { %s88_s20 = ssub.s32 %s663_s15, %s713_s18  ;;  %p101_p0 = scmp.ne.s32.totalorder %s659_s14, %s655_s13 }
   0x6   : > { %p89_p1 = scmp.eq.s32.totalorder %s88_s20, 0  ;;  %p102_p2 = scmp.eq.s32.totalorder %s709_s16, 3 }
   0x7   : > { %p107_p3 = scmp.ne.s32.totalorder %s655_s13, %s651_s12  ;;  %p108_p4 = scmp.eq.s32.totalorder %s486_s17, 3 }
   0x8   : > { %s724_s21 = scalar_select %p89_p1, %s659_s14, %s91_s19  }
   0x9   : > { %p726_p5 = por %p102_p2, %p101_p0  ;;  %p730_p6 = por %p108_p4, %p107_p3 }
   0xa   : > { %p489_p7 = scmp.ge.s32.totalorder %s663_s15, 1  ;;  %p141_p8 = scmp.lt.s32.totalorder %s663_s15, 5 }
   0xc   : > { %p142_p9 = pnand %p489_p7, %p141_p8 }
   0xd   : > { %s491_s26 = sshll.u32 (!%p142_p9), %s709_s16, 4  ;;  %s162_s4 = sand.u32 (!%p142_p9), 1, %s655_s13  }
   0xe   : > { %145 = sbr.rel (%p142_p9) target bundleno = 248 (0xf8), region = 32  ;;  %p166_p10 = scmp.lt.s32.totalorder (!%p142_p9), %s491_s26, 63 }
   0xf   : > { %s490_s5 = sshll.u32 (!%p142_p9), %s162_s4, 7  ;;  %s516_s9 = sshll.u32 (!%p142_p9), %s709_s16, 11 }
  0x10   : > { %s765_s8 = scalar_lea.vmem (!%p142_p9), [#allocation2], %s490_s5  ;;  %s784_s19 = scalar_lea.hbm (!%p142_p9), %s837_s3, %s516_s9 }
  0x11   : > { %s424_s10 = sshll.u32 (!%p142_p9), %s765_s8, 4  ;;  %s794_s16 = scalar_lea.sflag (!%p142_p9), [#allocation3], %s162_s4  ;;  %s786_s10 = int_to_ptr.vmem [resolvable:$true] %s424_s10 }
  0x12   : > { %s603_s20 = scalar_lea.vmem (!%p142_p9), %s786_s10, 2048  ;;  %s665_s24 = smov (!%p142_p9), [#allocation2]  }
  0x13   : > { %v188_v0 = vld [vmem:[%s835_s1] sm:$0xf]  ;;  %vm245_vm0 = vcmask 1043456   ;;  %s845_s26 = smov (!%p166_p10, %s491_s26), 63  ;;  %vm196_vm1 = vcmask 31744   ;;  %p604_p11 = scmp.ne.s32.totalorder %s786_s10, %s603_s20 }
  0x14   : > { %534 = vmatprep.subr.msk.mxu0 %vm245_vm0, %v188_v0  ;;  %560 = vmatprep.subr.msk.mxu1 %vm245_vm0, %v188_v0  ;;  %s492_s27 = sshll.u32 %s845_s26, 3  ;;  %v493_v17 = vld [vmem:[%s836_s2] ss:$0 sm:$0xff]  ;;  %s607_s25 = sshll.u32 %s665_s24, 4  ;;  %s608_s25 = int_to_ptr.vmem [resolvable:$false] %s607_s25 }
  0x15   : > { %535 = vmatpush3.msk.msra.mxu0 %vm245_vm0, %v188_v0  ;;  %561 = vmatpush3.msk.msra.mxu1 %vm245_vm0, %v188_v0  ;;  %s169_s30 = scalar_lea.vmem %s834_s0, %s492_s27  ;;  %p605_p12 = pnand %p604_p11, %p726_p5 }
  0x16   : > { %v172_v1 = vld [vmem:[%s169_s30] sm:$0xff]  ;;  %v173_v3 = vld [vmem:[%s169_s30 + $0x8] sm:$0xff]  ;;  %v174_v5 = vld [vmem:[%s169_s30 + $0x10] sm:$0xff]  ;;  %s609_s26 = scalar_lea.vmem %s608_s25, 4096  ;;  %p610_p0 = scmp.lt.s32.totalorder %s786_s10, %s608_s25 }
  0x17   : > { %v180_v2 = vld [vmem:[%s169_s30 + $0x40] sm:$0xff]  ;;  %536 = vmatprep.mubr.msk.f32.mxu0 %vm196_vm1, %v172_v1  ;;  %v181_v4 = vld [vmem:[%s169_s30 + $0x48] sm:$0xff]  ;;  %v182_v6 = vld [vmem:[%s169_s30 + $0x50] sm:$0xff]  ;;  %p606_p13 = pneg %p605_p12  ;;  %p611_p1 = scmp.lt.s32.totalorder %s609_s26, %s603_s20 }
  0x18   : > { %548 = vmatprep.mubr.msk.f32.mxu1 %vm196_vm1, %v180_v2  ;;  %537 = vmatmul.mubr.msk.f32.vlgmr.msra.gmra.mxu0 %vm196_vm1, %v173_v3  ;;  %v175_v7 = vld [vmem:[%s169_s30 + $0x18] sm:$0xff]  ;;  %v176_v9 = vld [vmem:[%s169_s30 + $0x20] sm:$0xff]  ;;  %v177_v11 = vld [vmem:[%s169_s30 + $0x28] sm:$0xff] }
  0x19   : > { %549 = vmatmul.mubr.msk.f32.vlgmr.msra.gmra.mxu1 %vm196_vm1, %v181_v4  ;;  %539 = vmatprep.mubr.msk.f32.mxu0 %vm196_vm1, %v174_v5  ;;  %v183_v8 = vld [vmem:[%s169_s30 + $0x58] sm:$0xff]  ;;  %v184_v10 = vld [vmem:[%s169_s30 + $0x60] sm:$0xff]  ;;  %v185_v12 = vld [vmem:[%s169_s30 + $0x68] sm:$0xff]  ;;  %p612_p2 = por %p611_p1, %p610_p0 }
  0x1a   : > { %551 = vmatprep.mubr.msk.f32.mxu1 %vm196_vm1, %v182_v6  ;;  %v178_v13 = vld [vmem:[%s169_s30 + $0x30] sm:$0xff]  ;;  %v179_v15 = vld [vmem:[%s169_s30 + $0x38] sm:$0xff] }
  0x1b   : > { %v186_v14 = vld [vmem:[%s169_s30 + $0x70] sm:$0xff]  ;;  %v187_v16 = vld [vmem:[%s169_s30 + $0x78] sm:$0xff]  ;;  %p613_p3 = pnand %p612_p2, %p606_p13 }
  0x1c   : > { %540 = vmatmul.mubr.msk.f32.gmra.mxu0 %vm196_vm1, %v175_v7 }
  0x1d   : > { %552 = vmatmul.mubr.msk.f32.gmra.mxu1 %vm196_vm1, %v183_v8  ;;  %542 = vmatprep.mubr.msk.f32.mxu0 %vm196_vm1, %v176_v9 }
  0x1e   : > { %554 = vmatprep.mubr.msk.f32.mxu1 %vm196_vm1, %v184_v10 }
  0x20   : > { %543 = vmatmul.mubr.msk.f32.gmra.mxu0 %vm196_vm1, %v177_v11 }
  0x21   : > { %555 = vmatmul.mubr.msk.f32.gmra.mxu1 %vm196_vm1, %v185_v12  ;;  %545 = vmatprep.mubr.msk.f32.mxu0 %vm196_vm1, %v178_v13 }
  0x22   : > { %557 = vmatprep.mubr.msk.f32.mxu1 %vm196_vm1, %v186_v14 }
  0x24   : > { %546 = vmatmul.mubr.msk.f32.gmra.mxu0 %vm196_vm1, %v179_v15 }
  0x25   : > { %558 = vmatmul.mubr.msk.f32.gmra.mxu1 %vm196_vm1, %v187_v16 }
  0xd8   : > { %v538_v18 = vpop.f32.mrf.mxu0 }
  0xd9   : > { %v550_v19 = vpop.f32.mrf.mxu1  ;;  %v321_v20 = vadd.f32 %v538_v18, %v493_v17 }
  0xda   : > { %v361_v21 = vadd.f32 %v550_v19, %v493_v17  ;;  %v315_v22 = vpop.f32.mrf.mxu0 }
  0xdb   : > { %v355_v23 = vpop.f32.mrf.mxu1  ;;  %395 = vst [vmem:[%s765_s8 + $0x8] sm:$0xff] %v321_v20  ;;  %v316_v24 = vadd.f32 %v493_v17, %v315_v22 }
  0xdc   : > { %403 = vst [vmem:[%s765_s8 + $0x48] sm:$0xff] %v361_v21  ;;  %v356_v25 = vadd.f32 %v493_v17, %v355_v23  ;;  %v541_v26 = vpop.f32.mrf.mxu0 }
  0xdd   : > { %v553_v27 = vpop.f32.mrf.mxu1  ;;  %394 = vst [vmem:[%s765_s8] sm:$0xff] %v316_v24  ;;  %v331_v28 = vadd.f32 %v541_v26, %v493_v17 }
  0xde   : > { %402 = vst [vmem:[%s765_s8 + $0x40] sm:$0xff] %v356_v25  ;;  %v371_v29 = vadd.f32 %v553_v27, %v493_v17  ;;  %v325_v30 = vpop.f32.mrf.mxu0 }
  0xdf   : > { %v365_v31 = vpop.f32.mrf.mxu1  ;;  %397 = vst [vmem:[%s765_s8 + $0x18] sm:$0xff] %v331_v28  ;;  %v326_v32 = vadd.f32 %v493_v17, %v325_v30 }
  0xe0   : > { %405 = vst [vmem:[%s765_s8 + $0x58] sm:$0xff] %v371_v29  ;;  %v366_v33 = vadd.f32 %v493_v17, %v365_v31  ;;  %v544_v34 = vpop.f32.mrf.mxu0 }
  0xe1   : > { %v556_v35 = vpop.f32.mrf.mxu1  ;;  %396 = vst [vmem:[%s765_s8 + $0x10] sm:$0xff] %v326_v32  ;;  %v341_v36 = vadd.f32 %v544_v34, %v493_v17 }
  0xe2   : > { %404 = vst [vmem:[%s765_s8 + $0x50] sm:$0xff] %v366_v33  ;;  %v381_v37 = vadd.f32 %v556_v35, %v493_v17  ;;  %v335_v38 = vpop.f32.mrf.mxu0 }
  0xe3   : > { %v375_v39 = vpop.f32.mrf.mxu1  ;;  %399 = vst [vmem:[%s765_s8 + $0x28] sm:$0xff] %v341_v36  ;;  %v336_v40 = vadd.f32 %v493_v17, %v335_v38 }
  0xe4   : > { %407 = vst [vmem:[%s765_s8 + $0x68] sm:$0xff] %v381_v37  ;;  %v376_v41 = vadd.f32 %v493_v17, %v375_v39  ;;  %v547_v42 = vpop.f32.mrf.mxu0 }
  0xe5   : > { %v559_v43 = vpop.f32.mrf.mxu1  ;;  %398 = vst [vmem:[%s765_s8 + $0x20] sm:$0xff] %v336_v40  ;;  %v351_v44 = vadd.f32 %v547_v42, %v493_v17 }
  0xe6   : > { %406 = vst [vmem:[%s765_s8 + $0x60] sm:$0xff] %v376_v41  ;;  %v391_v45 = vadd.f32 %v559_v43, %v493_v17  ;;  %v345_v46 = vpop.f32.mrf.mxu0 }
  0xe7   : > { %v385_v47 = vpop.f32.mrf.mxu1  ;;  %401 = vst [vmem:[%s765_s8 + $0x38] sm:$0xff] %v351_v44  ;;  %v346_v48 = vadd.f32 %v493_v17, %v345_v46 }
  0xe8   : > { %409 = vst [vmem:[%s765_s8 + $0x78] sm:$0xff] %v391_v45  ;;  %v386_v49 = vadd.f32 %v493_v17, %v385_v47 }
  0xe9   : > { %400 = vst [vmem:[%s765_s8 + $0x30] sm:$0xff] %v346_v48 }
  0xea   : > { %408 = vst [vmem:[%s765_s8 + $0x70] sm:$0xff] %v386_v49 }
  0xeb   : > { %616 = shalt.err (!%p613_p3)
}
  0xec   : > { %s617_s27 = scalar_lea.hbm %s784_s19, 2048  ;;  %s621_s30 = scalar_lea.hbm %s837_s3, 8192 }
  0xed   : > { %p618_p4 = scmp.ne.s32.totalorder %s784_s19, %s617_s27  ;;  %p622_p9 = scmp.lt.s32.totalorder %s784_s19, %s837_s3 }
  0xee   : > { %p623_p10 = scmp.lt.s32.totalorder %s621_s30, %s617_s27 }
  0xef   : > { %p619_p7 = pnand %p618_p4, %p726_p5 }
  0xf0   : > { %p624_p11 = por %p623_p10, %p622_p9 }
  0xf1   : > { %p620_p8 = pneg %p619_p7 }
  0xf3   : > { %p625_p12 = pnand %p624_p11, %p620_p8 }
  0xf5   : > { %628 = shalt.err (!%p625_p12)
}
  0xf6   : > { %s666_s6 = smov 128   ;;  %s667_s7 = smov 8  }
  0xf7   : > { %562 = dma.vmem_to_hbm [thread:$0]  (%p726_p5), %s786_s10, 2048, %s784_s19, %s794_s16, %s666_s6, %s666_s6, %s667_s7  }
  0xf8 PF: > { %p568_p13 = scmp.ge.s32.totalorder %s663_s15, 2  ;;  %s439_s8 = sand.u32 1, %s651_s12  }
  0xf9   : > { %s440_s9 = scalar_lea.sflag [#allocation3], %s439_s8 }
  0xfa   : > { %p565_p0 = pnand %p568_p13, %p730_p6 }
  0xfc   : > { %p566_p1 = pneg %p565_p0 }
  0xfe   : > { %646 = dma.done.wait (%p566_p1), %s440_s9, 2048  }
  0xff   : > { %648 = vsyncadd (%p566_p1), %s440_s9, 4294965248  ;;  %p13_p2 = scmp.ge.s32.totalorder %s713_s18, 6   ;;  %s840_s12 = smov %s655_s13 }
 0x100   : > { %s841_s13 = smov %s659_s14  ;;  %s842_s14 = smov %s724_s21 }
 0x101   : > { %s843_s15 = smov %s713_s18  ;;  %15 = sbr.rel (!%p13_p2) target bundleno = 3 (0x3), region = 67 }
 0x106   :  { %445 = vsyncpa [#allocation3], 1 }
 0x107   :  { %447 = vsyncpa [#allocation3 + $0x1], 1 }

</bundles_post_ra>
